<compile_context>
chip_gen: v5e
topology: v5e:2x2
jax: 0.10.0
libtpu: 0.0.40
codegen_flags: <defaults>
</compile_context>

<pallas_src>
import math

import jax
import jax.numpy as jnp
from jax.experimental import pallas as pl
from jax.experimental.pallas import tpu as pltpu


_VMEM_BUDGET_BYTES = 20 << 20   # target for the double-buffered working set
_VMEM_LIMIT_BYTES = 32 << 20    # explicit scoped-VMEM limit, safe on v5e/v6e/v7x


# ---------------------------------------------------------------------------
# Kernel: fused  out = x + scale * pe   on one (ts, B, D) tile
# ---------------------------------------------------------------------------
def _pos_enc_kernel(scale_ref, x_ref, pe_ref, o_ref):
    # scale_ref: (1,) f32 in SMEM
    # x_ref / o_ref: (ts, B, D) VMEM tile of the seq-first activation
    # pe_ref: (ts, D) f32 VMEM tile of the positional-encoding table
    scale = scale_ref[0]
    x = x_ref[...].astype(jnp.float32)
    pe = pe_ref[...][:, None, :]          # broadcast over the batch axis
    o_ref[...] = (x + scale * pe).astype(o_ref.dtype)


def _round_up(n, m):
    return ((n + m - 1) // m) * m


def _choose_block_seq(S, B, D, itemsize, block_seq=None):
    """Pick the seq-tile length ts for the (ts, B, D) x/out blocks."""
    if block_seq is not None:
        return max(1, min(block_seq, S))
    # Sublane packing of the (B, D) plane: B pads to 8 (f32) / 16 (bf16) / 32 (i8).
    sublane = max(8, 32 // max(itemsize, 1))
    b_pad = _round_up(B, sublane)
    # Double-buffered bytes per seq row: x + out (x dtype, padded B) + pe (f32).
    per_row = 2 * (2 * b_pad * D * itemsize + D * 4)
    ts = max(8, _VMEM_BUDGET_BYTES // per_row)
    ts = min(ts, S)
    if ts >= S:
        # Whole sequence fits in one tile: split in two (still 8-aligned) when
        # possible so a v7x megacore can shard the grid across both TensorCores.
        if S >= 16 and S % 16 == 0:
            return S // 2
        return S
    ts = max(8, (ts // 8) * 8)            # pe tile puts ts on sublanes (f32 -> 8)
    # Prefer an aligned divisor of S (no masked edge tile) if one is close by.
    t = ts
    while t >= 8 and 2 * t >= ts:
        if S % t == 0:
            return t
        t -= 8
    return ts                             # ragged: cdiv grid + masked edge tile


# ---------------------------------------------------------------------------
# Seq-first entry point: x is (S, B, D) exactly like the nn.Module.
# ---------------------------------------------------------------------------
def positional_encoding_fwd(x, pe, scale, *, block_seq=None, donate_x=False):
    """x: (S, B, D); pe: (max_len, D) float32; scale: (1,) float32."""
    S, B, D = x.shape
    max_len = pe.shape[0]
    if S > max_len:
        raise ValueError(f"seq_len {S} exceeds pe max_len {max_len}")

    itemsize = jnp.dtype(x.dtype).itemsize
    ts = _choose_block_seq(S, B, D, itemsize, block_seq)

    if ts % 8 != 0:
        # pe's (ts, D) block puts ts on sublanes; a non-multiple-of-8 ts is only
        # legal via the full-dim exception -> collapse to a single full-S tile.
        ts, num_tiles = S, 1
        pe_in = pe if S == max_len else pe[:S]
    else:
        num_tiles = pl.cdiv(S, ts)
        pe_in = pe
        if num_tiles * ts > max_len:
            # Ragged edge tile would read past the pe table: zero-pad (rare).
            pe_in = jnp.pad(pe, ((0, num_tiles * ts - max_len), (0, 0)))

    kwargs = {}
    if donate_x:
        kwargs["input_output_aliases"] = {1: 0}   # reuse x's HBM buffer for out

    return pl.pallas_call(
        _pos_enc_kernel,
        out_shape=jax.ShapeDtypeStruct((S, B, D), x.dtype),
        grid=(num_tiles,),
        in_specs=[
            pl.BlockSpec(memory_space=pltpu.MemorySpace.SMEM),     # scale (1,)
            pl.BlockSpec((ts, B, D), lambda s: (s, 0, 0)),         # x tile
            pl.BlockSpec((ts, D), lambda s: (s, 0)),               # pe tile
        ],
        out_specs=pl.BlockSpec((ts, B, D), lambda s: (s, 0, 0)),
        compiler_params=pltpu.CompilerParams(
            dimension_semantics=("parallel",),
            vmem_limit_bytes=_VMEM_LIMIT_BYTES),
        **kwargs,
    )(scale, x, pe_in)


# ---------------------------------------------------------------------------
# Parameter / buffer construction (deterministic, mirrors __init__)
# ---------------------------------------------------------------------------
def make_pe_buffer(d_model: int, max_len: int) -> jnp.ndarray:
    position = jnp.arange(max_len, dtype=jnp.float32)[:, None]          # (L, 1)
    div_term = jnp.exp(
        jnp.arange(0, d_model, 2, dtype=jnp.float32)
        * (-math.log(10000.0) / d_model)
    )                                                                    # (D/2,)
    ang = position * div_term                                            # (L, D/2)
    # interleave: pe[:, 0::2] = sin, pe[:, 1::2] = cos
    pe = jnp.stack([jnp.sin(ang), jnp.cos(ang)], axis=-1).reshape(max_len, d_model)
    return pe.astype(jnp.float32)


if __name__ == "__main__":
    d_model = 128      # lane-dense last dim (multiple of 128)
    max_len = 64
    seq_len = 16       # auto-tiler picks two 8-row seq tiles -> exercises the grid
    batch = 2

    key = jax.random.PRNGKey(0)
    x = jax.random.normal(key, (seq_len, batch, d_model), dtype=jnp.float32)

    pe = make_pe_buffer(d_model, max_len)
    scale = jnp.ones((1,), dtype=jnp.float32)   # nn.Parameter(torch.ones(1))

    ref = x + scale[0] * pe[:seq_len][:, None, :]

    # Native seq-first path, f32, auto tile size (no transposes anywhere).
    out = jax.block_until_ready(positional_encoding_fwd(x, pe, scale))
    assert out.shape == (seq_len, batch, d_model)
    assert jnp.allclose(out, ref, atol=1e-6, rtol=1e-6)

    # bf16 storage (halves HBM traffic); math is still f32 inside the kernel.
    x_bf16 = x.astype(jnp.bfloat16)
    out_bf16 = jax.block_until_ready(positional_encoding_fwd(x_bf16, pe, scale))
    ref_bf16 = (x_bf16.astype(jnp.float32)
                + scale[0] * pe[:seq_len][:, None, :]).astype(jnp.bfloat16)
    assert out_bf16.dtype == jnp.bfloat16
    assert jnp.allclose(out_bf16.astype(jnp.float32),
                        ref_bf16.astype(jnp.float32), atol=1e-2, rtol=1e-2)

    # Aliased path (x -> out): x_copy is not reused after this call.
    x_copy = x + 0.0
    out_alias = jax.block_until_ready(
        positional_encoding_fwd(x_copy, pe, scale, donate_x=True))
    assert jnp.allclose(out_alias, ref, atol=1e-6, rtol=1e-6)

    print("KERNEL_OK")
</pallas_src>

<mosaic_0001>
module attributes {stable_mosaic.version = 11 : i64} {
  func.func @_pos_enc_kernel(%arg0: i32, %arg1: memref<1xf32, #tpu.memory_space<smem>>, %arg2: memref<8x2x128xf32, #tpu.memory_space<vmem>>, %arg3: memref<8x128xf32, #tpu.memory_space<vmem>>, %arg4: memref<8x2x128xf32, #tpu.memory_space<vmem>>) attributes {dimension_semantics = [#tpu.dimension_semantics<parallel>], iteration_bounds = array<i64: 2>, scalar_prefetch = 0 : i64, scratch_operands = 0 : i64, tpu.core_type = #tpu.core_type<tc>, window_params = [{transform_indices = @transform_0, window_bounds = array<i64: 1>}, {transform_indices = @transform_1, window_bounds = array<i64: 8, 2, 128>}, {transform_indices = @transform_2, window_bounds = array<i64: 8, 128>}, {transform_indices = @transform_3, window_bounds = array<i64: 8, 2, 128>}]} {
    %c0 = arith.constant 0 : index
    %0 = memref.load %arg1[%c0] : memref<1xf32, #tpu.memory_space<smem>>
    %c0_0 = arith.constant 0 : index
    %c0_1 = arith.constant 0 : index
    %c0_2 = arith.constant 0 : index
    %1 = vector.load %arg2[%c0_0, %c0_1, %c0_2] : memref<8x2x128xf32, #tpu.memory_space<vmem>>, vector<8x2x128xf32>
    %c0_3 = arith.constant 0 : index
    %c0_4 = arith.constant 0 : index
    %2 = vector.load %arg3[%c0_3, %c0_4] : memref<8x128xf32, #tpu.memory_space<vmem>>, vector<8x128xf32>
    %3 = vector.shape_cast %2 : vector<8x128xf32> to vector<8x1x128xf32>
    %4 = vector.broadcast %0 : f32 to vector<8x1x128xf32>
    %5 = arith.mulf %4, %3 : vector<8x1x128xf32>
    %6 = vector.broadcast %5 : vector<8x1x128xf32> to vector<8x2x128xf32>
    %7 = arith.addf %1, %6 : vector<8x2x128xf32>
    %c0_5 = arith.constant 0 : index
    %c0_6 = arith.constant 0 : index
    %c0_7 = arith.constant 0 : index
    %8 = vector.load %arg4[%c0_5, %c0_6, %c0_7] : memref<8x2x128xf32, #tpu.memory_space<vmem>>, vector<8x2x128xf32>
    tpu.vector_store %arg4[%c0_5, %c0_6, %c0_7], %7 {strides = array<i32>} : memref<8x2x128xf32, #tpu.memory_space<vmem>>, vector<8x2x128xf32>,
    return
  }
  func.func @transform_0(%arg0: i32) -> i32 {
    %c0_i32 = arith.constant 0 : i32
    %c0_i32_0 = arith.constant 0 : i32
    return %c0_i32 : i32
  }
  func.func @transform_1(%arg0: i32) -> (i32, i32, i32) {
    %c0_i32 = arith.constant 0 : i32
    %c0_i32_0 = arith.constant 0 : i32
    %c0_i32_1 = arith.constant 0 : i32
    return %arg0, %c0_i32, %c0_i32_0 : i32, i32, i32
  }
  func.func @transform_2(%arg0: i32) -> (i32, i32) {
    %c0_i32 = arith.constant 0 : i32
    %c0_i32_0 = arith.constant 0 : i32
    return %arg0, %c0_i32 : i32, i32
  }
  func.func @transform_3(%arg0: i32) -> (i32, i32, i32) {
    %c0_i32 = arith.constant 0 : i32
    %c0_i32_0 = arith.constant 0 : i32
    %c0_i32_1 = arith.constant 0 : i32
    return %arg0, %c0_i32, %c0_i32_0 : i32, i32, i32
  }
}

</mosaic_0001>

<bundles_post_ra>
// kernel: tpu_custom_call.1
= control target key start
LH: loop header
LB: loop body
LE: loop exit
PB: predicated region body
PF: predicated region fallthrough
CT: control target
= control target key end

     0   :  { %s829_s0 = inlined_call_operand.<no memory space> [shape: f32[1], index: 0, kind: input, shape index: {}]   ;;  %s830_s1 = inlined_call_operand.hbm [shape: f32[16,2,128], index: 1, kind: input, shape index: {}]   ;;  %s831_s2 = inlined_call_operand.hbm [shape: f32[64,128], index: 2, kind: input, shape index: {}]   ;;  %s832_s3 = inlined_call_operand.hbm [shape: f32[16,2,128], index: 3, kind: output, shape index: {}]  }
   0x1   :  { %8 = sst [smem:[#allocation2]] %s829_s0 }
   0x2   :  { %9 = vsyncpa [#allocation4], 0 }
   0x3   :  { %11 = vsyncpa [#allocation4 + $0x1], 0 }
   0x4   :  { %12 = vsyncpa [#allocation7], 0 }
   0x5   :  { %14 = vsyncpa [#allocation7 + $0x1], 0 }
   0x6   :  { %15 = vsyncpa [#allocation5], 0 }
   0x7   :  { %17 = vsyncpa [#allocation5 + $0x1], 0  ;;  %s652_s14 = smov 0   ;;  %s654_s15 = smov 0  }
   0x8   :  { %s656_s16 = smov 0   ;;  %s658_s17 = smov 0  }
   0x9 LB: > { %s673_s0 = sadd.s32 4294967295, %s623_s17   ;;  %s419_s18 = sadd.s32 4294967294, %s623_s17   ;;  %s623_s17 = sphi %s658_s17, %s843_s17   ;;  %s619_s16 = sphi %s656_s16, %s842_s16   ;;  %s615_s15 = sphi %s654_s15, %s841_s15   ;;  %s611_s14 = sphi %s652_s14, %s840_s14  }
   0xa   : > { %s677_s19 = sadd.s32 1, %s623_s17   ;;  %s51_s20 = sadd.s32 1, %s619_s16 }
   0xb   : > { %s48_s21 = ssub.s32 %s623_s17, %s677_s19  ;;  %p58_p0 = scmp.ne.s32.totalorder %s619_s16, %s615_s15 }
   0xc   : > { %p49_p1 = scmp.eq.s32.totalorder %s48_s21, 0  ;;  %p59_p2 = scmp.eq.s32.totalorder %s623_s17, 0 }
   0xd   : > { %p64_p3 = scmp.ne.s32.totalorder %s615_s15, %s611_s14  ;;  %p65_p4 = scmp.eq.s32.totalorder %s673_s0, 0 }
   0xe   : > { %s689_s22 = scalar_select %p49_p1, %s619_s16, %s51_s20  }
   0xf   : > { %p691_p5 = por %p59_p2, %p58_p0  ;;  %p695_p6 = por %p65_p4, %p64_p3 }
  0x10   : > { %p114_p7 = scmp.eq.s32.totalorder %s673_s0, 1  ;;  %p120_p8 = scmp.eq.s32.totalorder %s419_s18, 1 }
  0x11   : > { %p455_p10 = scmp.lt.s32.totalorder %s623_s17, 2  ;;  %s711_s27 = sand.u32 1, %s619_s16  }
  0x12   : > { %p702_p11 = por %p114_p7, %p58_p0  ;;  %p706_p12 = por %p120_p8, %p64_p3 }
  0x13   : > { %s436_s28 = sshll.u32 %s623_s17, 4  ;;  %s422_s29 = sshll.u32 %s711_s27, 4 }
  0x14   : > { %s152_s5 = scalar_lea.hbm %s830_s1, %s436_s28  ;;  %s147_s7 = scalar_lea.vmem [#allocation3], %s422_s29 }
  0x15   : > { %s153_s6 = sshll.u32 %s152_s5, 4  ;;  %s155_s8 = sshll.u32 %s147_s7, 4  ;;  %s154_s6 = int_to_ptr.hbm [resolvable:$true] %s153_s6  ;;  %s156_s8 = int_to_ptr.vmem [resolvable:$true] %s155_s8 }
  0x16   : > { %p720_p13 = pnand %p455_p10, %p691_p5  ;;  %p427_p0 = scmp.ge.s32.totalorder %s623_s17, 1 }
  0x17   : > { %p182_p1 = scmp.lt.s32.totalorder %s623_s17, 3  ;;  %s144_s10 = scalar_lea.sflag [#allocation4], %s711_s27 }
  0x18   : > { %s493_s11 = sshra.s32 %s154_s6, 4  ;;  %p497_p3 = pneg %p720_p13  ;;  %s494_s11 = int_to_ptr.hbm [resolvable:$true] %s493_s11 }
  0x19   : > { %s495_s12 = scalar_lea.hbm %s494_s11, 16  ;;  %s500_s20 = scalar_lea.hbm %s830_s1, 32 }
  0x1a   : > { %p496_p2 = scmp.ne.s32.totalorder %s494_s11, %s495_s12  ;;  %p501_p5 = scmp.lt.s32.totalorder %s494_s11, %s830_s1 }
  0x1b   : > { %p502_p8 = scmp.lt.s32.totalorder %s500_s20, %s495_s12 }
  0x1c   : > { %p498_p4 = pnand %p497_p3, %p496_p2 }
  0x1d   : > { %p503_p10 = por %p502_p8, %p501_p5 }
  0x1e   : > { %p499_p7 = pneg %p498_p4 }
  0x20   : > { %p504_p9 = pnand %p503_p10, %p499_p7 }
  0x22   : > { %507 = shalt.err (!%p504_p9)
}
  0x23   : > { %s625_s28 = smov 32   ;;  %s626_s29 = smov 2  }
  0x24   : > { %447 = dma.hbm_to_vmem [thread:$0]  (!%p720_p13), %s154_s6, 256, %s156_s8, %s144_s10, %s625_s28, %s625_s28, %s626_s29  }
  0x25   : > { %p744_p2 = pnand %p427_p0, %p182_p1  ;;  %s425_s4 = sshll.u32 %s711_s27, 3 }
  0x26   : > { %s426_s5 = sshll.u32 %s623_s17, 3  ;;  %s169_s18 = scalar_lea.vmem [#allocation6], %s425_s4 }
  0x27   : > { %s173_s12 = scalar_lea.hbm %s831_s2, %s426_s5  ;;  %s177_s20 = sshll.u32 %s169_s18, 4  ;;  %s178_s20 = int_to_ptr.vmem [resolvable:$true] %s177_s20 }
  0x28   : > { %s175_s13 = sshll.u32 %s173_s12, 4  ;;  %s166_s21 = scalar_lea.sflag [#allocation7], %s711_s27  ;;  %s176_s13 = int_to_ptr.hbm [resolvable:$true] %s175_s13 }
  0x29   : > { %s523_s23 = sshra.s32 %s176_s13, 4  ;;  %s530_s28 = scalar_lea.hbm %s831_s2, 64  ;;  %s524_s23 = int_to_ptr.hbm [resolvable:$true] %s523_s23 }
  0x2a   : > { %s525_s6 = scalar_lea.hbm %s524_s23, 8  ;;  %p531_p4 = scmp.lt.s32.totalorder %s524_s23, %s831_s2 }
  0x2b   : > { %p526_p9 = scmp.ne.s32.totalorder %s524_s23, %s525_s6  ;;  %p532_p7 = scmp.lt.s32.totalorder %s530_s28, %s525_s6 }
  0x2d   : > { %p528_p0 = pnand %p526_p9, %p497_p3  ;;  %p533_p5 = por %p532_p7, %p531_p4 }
  0x2f   : > { %p529_p1 = pneg %p528_p0 }
  0x31   : > { %p534_p8 = pnand %p533_p5, %p529_p1 }
  0x33   : > { %537 = shalt.err (!%p534_p8)
}
  0x34   : > { %450 = dma.hbm_to_vmem [thread:$0]  (!%p720_p13), %s176_s13, 128, %s178_s20, %s166_s21  }
  0x35   : > { %186 = sbr.rel (%p744_p2) target bundleno = 86 (0x56), region = 32  ;;  %s768_s27 = sand.u32 (!%p744_p2), 1, %s615_s15  }
  0x36   : > { %s428_s4 = sshll.u32 (!%p744_p2), %s768_s27, 4  ;;  %s189_s7 = scalar_lea.sflag (!%p744_p2), [#allocation4], %s768_s27 }
  0x37   : > { %s774_s11 = scalar_lea.vmem (!%p744_p2), [#allocation3], %s428_s4 }
  0x3a   : > { %598 = dma.done.wait (%p695_p6), %s189_s7, 256  }
  0x3b   : > { %600 = vsyncadd (%p695_p6), %s189_s7, 4294967040  ;;  %s429_s9 = sshll.u32 %s768_s27, 3  ;;  %s199_s30 = scalar_lea.sflag [#allocation7], %s768_s27 }
  0x3c   : > { %s202_s12 = scalar_lea.vmem [#allocation6], %s429_s9 }
  0x3d   : > { %602 = dma.done.wait (%p695_p6), %s199_s30, 128  }
  0x3e   : > { %604 = vsyncadd (%p695_p6), %s199_s30, 4294967168  ;;  %s233_s13 = sld [smem:[#allocation2]]  ;;  %v242_v0 = vld [vmem:[%s202_s12] sm:$0xff]  ;;  %s437_s24 = sshll.u32 %s673_s0, 4  ;;  %v238_v22 = vld [vmem:[%s774_s11 + $0x8] sm:$0x3] }
  0x3f   : > { %v244_v3 = vrot.slane %v242_v0, 1  ;;  %v245_v4 = vrot.slane %v242_v0, 2  ;;  %v234_v5 = vld [vmem:[%s774_s11] sm:$0x3]  ;;  %v246_v6 = vrot.slane %v242_v0, 3  ;;  %v247_v7 = vrot.slane %v242_v0, 4  ;;  %s319_s21 = scalar_lea.hbm %s832_s3, %s437_s24 }
  0x40   : > { %v248_v11 = vrot.slane %v242_v0, 5  ;;  %v235_v12 = vld [vmem:[%s774_s11 + $0x2] sm:$0x3]  ;;  %v236_v13 = vld [vmem:[%s774_s11 + $0x4] sm:$0x3]  ;;  %v249_v16 = vrot.slane %v242_v0, 6 }
  0x41   : > { %v250_v17 = vrot.slane %v242_v0, 7  ;;  %v237_v21 = vld [vmem:[%s774_s11 + $0x6] sm:$0x3]  ;;  %v239_v26 = vld [vmem:[%s774_s11 + $0xa] sm:$0x3]  ;;  %s230_s0 = scalar_lea.vmem [#allocation8], %s428_s4 }
  0x42   : > { %v240_v32 = vld [vmem:[%s774_s11 + $0xc] sm:$0x3]  ;;  %v241_v36 = vld [vmem:[%s774_s11 + $0xe] sm:$0x3]  ;;  %s320_s23 = sshll.u32 %s230_s0, 4  ;;  %s322_s6 = sshll.u32 %s319_s21, 4  ;;  %s321_s23 = int_to_ptr.vmem [resolvable:$true] %s320_s23  ;;  %s323_s6 = int_to_ptr.hbm [resolvable:$true] %s322_s6 }
  0x43   : > { %s308_s8 = scalar_lea.sflag [#allocation5], %s768_s27  ;;  %s567_s10 = sshra.s32 %s323_s6, 4  ;;  %s568_s10 = int_to_ptr.hbm [resolvable:$true] %s567_s10 }
  0x44   : > { %v258_v1 = vstv %s233_s13  ;;  %s569_s28 = scalar_lea.hbm %s568_s10, 16  ;;  %s573_s4 = scalar_lea.hbm %s832_s3, 32 }
  0x45   : > { %v259_v2 = vmul.f32 %v258_v1, %v242_v0  ;;  %v260_v9 = vmul.f32 %v258_v1, %v244_v3  ;;  %v261_v10 = vmul.f32 %v258_v1, %v245_v4  ;;  %v262_v14 = vmul.f32 %v258_v1, %v246_v6  ;;  %p570_p6 = scmp.ne.s32.totalorder %s568_s10, %s569_s28  ;;  %p574_p10 = scmp.lt.s32.totalorder %s568_s10, %s832_s3 }
  0x46   : > { %v263_v15 = vmul.f32 %v258_v1, %v247_v7  ;;  %v264_v23 = vmul.f32 %v258_v1, %v248_v11  ;;  %v265_v27 = vmul.f32 %v258_v1, %v249_v16  ;;  %v266_v28 = vmul.f32 %v258_v1, %v250_v17  ;;  %p575_p2 = scmp.lt.s32.totalorder %s573_s4, %s569_s28 }
  0x47   : > { %v275_v8 = vperm.slane %v259_v2, 0  ;;  %v276_v19 = vperm.slane %v260_v9, 0  ;;  %v277_v20 = vperm.slane %v261_v10, 0  ;;  %v278_v24 = vperm.slane %v262_v14, 0  ;;  %p571_p13 = pnand %p570_p6, %p702_p11 }
  0x48   : > { %v279_v25 = vperm.slane %v263_v15, 0  ;;  %v280_v31 = vperm.slane %v264_v23, 0  ;;  %v281_v35 = vperm.slane %v265_v27, 0  ;;  %v282_v37 = vperm.slane %v266_v28, 0  ;;  %p576_p9 = por %p575_p2, %p574_p10 }
  0x49   : > { %v291_v18 = vadd.f32 %v275_v8, %v234_v5  ;;  %v292_v29 = vadd.f32 %v276_v19, %v235_v12  ;;  %v293_v30 = vadd.f32 %v277_v20, %v236_v13  ;;  %v294_v33 = vadd.f32 %v278_v24, %v237_v21  ;;  %p572_p3 = pneg %p571_p13 }
  0x4a   : > { %v295_v34 = vadd.f32 %v279_v25, %v238_v22  ;;  %v296_v38 = vadd.f32 %v280_v31, %v239_v26  ;;  %v297_v39 = vadd.f32 %v281_v35, %v240_v32  ;;  %v298_v40 = vadd.f32 %v282_v37, %v241_v36 }
  0x4b   : > { %299 = vst [vmem:[%s230_s0] sm:$0x3] %v291_v18  ;;  %p577_p0 = pnand %p576_p9, %p572_p3 }
  0x4c   : > { %300 = vst [vmem:[%s230_s0 + $0x2] sm:$0x3] %v292_v29 }
  0x4d   : > { %301 = vst [vmem:[%s230_s0 + $0x4] sm:$0x3] %v293_v30 }
  0x4e   : > { %302 = vst [vmem:[%s230_s0 + $0x6] sm:$0x3] %v294_v33 }
  0x4f   : > { %303 = vst [vmem:[%s230_s0 + $0x8] sm:$0x3] %v295_v34 }
  0x50   : > { %304 = vst [vmem:[%s230_s0 + $0xa] sm:$0x3] %v296_v38 }
  0x51   : > { %305 = vst [vmem:[%s230_s0 + $0xc] sm:$0x3] %v297_v39 }
  0x52   : > { %306 = vst [vmem:[%s230_s0 + $0xe] sm:$0x3] %v298_v40 }
  0x53   : > { %580 = shalt.err (!%p577_p0)
}
  0x54   : > { %s627_s27 = smov 32   ;;  %s628_s9 = smov 2  }
  0x55   : > { %442 = dma.vmem_to_hbm [thread:$0]  (%p702_p11), %s321_s23, 256, %s323_s6, %s308_s8, %s627_s27, %s627_s27, %s628_s9  }
  0x56 PF: > { %s337_s30 = sand.u32 1, %s611_s14   ;;  %p839_p1 = scmp.ge.s32.totalorder %s623_s17, 2 }
  0x57   : > { %s338_s12 = scalar_lea.sflag [#allocation5], %s337_s30 }
  0x58   : > { %p452_p4 = pnand %p839_p1, %p706_p12 }
  0x5a   : > { %p453_p7 = pneg %p452_p4 }
  0x5c   : > { %606 = dma.done.wait (%p453_p7), %s338_s12, 256  }
  0x5d   : > { %608 = vsyncadd (%p453_p7), %s338_s12, 4294967040  ;;  %p20_p5 = scmp.ge.s32.totalorder %s677_s19, 4   ;;  %s840_s14 = smov %s615_s15 }
  0x5e   : > { %s841_s15 = smov %s619_s16  ;;  %s842_s16 = smov %s689_s22 }
  0x5f   : > { %s843_s17 = smov %s677_s19  ;;  %22 = sbr.rel (!%p20_p5) target bundleno = 9 (0x9), region = 90 }
  0x64   :  { %344 = vsyncpa [#allocation4], 1 }
  0x65   :  { %346 = vsyncpa [#allocation4 + $0x1], 1 }
  0x66   :  { %347 = vsyncpa [#allocation7], 1 }
  0x67   :  { %349 = vsyncpa [#allocation7 + $0x1], 1 }
  0x68   :  { %350 = vsyncpa [#allocation5], 1 }
  0x69   :  { %352 = vsyncpa [#allocation5 + $0x1], 1 }

</bundles_post_ra>
